<compile_context>
chip_gen: v6e
topology: v6e:2x2x1
jax: 0.10.0
libtpu: 0.0.40
codegen_flags: <defaults>
</compile_context>

<pallas_src>
import functools
import math

import jax
import jax.numpy as jnp
from jax import lax
from jax.experimental import pallas as pl
from jax.experimental.pallas import tpu as pltpu

_LANE = 128
_SUBLANE = 8
_VMEM_LIMIT = 32 * 1024 * 1024

# 32-bit mix constants (lowbias32 finalizer + golden ratio), as signed int32.
_MIX1 = 0x7FEB352D
_MIX2 = 0x846CA68B - (1 << 32)
_GOLD = 0x9E3779B9 - (1 << 32)


# ---------------------------------------------------------------------------
# Sinusoidal table (matches the PyTorch module's buffer; shape (max_len, d)).
# ---------------------------------------------------------------------------
def make_positional_table(max_len: int, d_model: int) -> jnp.ndarray:
    position = jnp.arange(max_len, dtype=jnp.float32)[:, None]
    div_term = jnp.exp(
        jnp.arange(0, d_model, 2, dtype=jnp.float32) * (-math.log(10000.0) / d_model)
    )
    angles = position * div_term
    pe = jnp.zeros((max_len, d_model), dtype=jnp.float32)
    pe = pe.at[:, 0::2].set(jnp.sin(angles))
    pe = pe.at[:, 1::2].set(jnp.cos(angles))
    return pe


# ---------------------------------------------------------------------------
# Kernels
# ---------------------------------------------------------------------------
def _hash_bits(g, seed):
    """Stateless hash of (int32 global index, int32 seed) -> int32 in [0, 2^31)."""
    h = g ^ (seed * jnp.int32(_GOLD))
    h = h ^ lax.shift_right_logical(h, jnp.int32(16))
    h = h * jnp.int32(_MIX1)
    h = h ^ lax.shift_right_logical(h, jnp.int32(15))
    h = h * jnp.int32(_MIX2)
    h = h ^ lax.shift_right_logical(h, jnp.int32(16))
    return h & jnp.int32(0x7FFFFFFF)


def _apply_dropout(y, g, seed, p):
    """Inverted dropout: keep with prob (1-p), scale kept values by 1/(1-p)."""
    thresh = jnp.int32(min(int(p * float(1 << 31)), (1 << 31) - 1))
    scale = jnp.float32(1.0 / (1.0 - p))
    r = _hash_bits(g, seed)
    return jnp.where(r >= thresh, y * scale, jnp.float32(0.0))


def _pe_add_kernel(x_ref, pe_ref, o_ref):
    # Works for both layouts: pe block broadcasts against the x block.
    y = x_ref[...].astype(jnp.float32) + pe_ref[...].astype(jnp.float32)
    o_ref[...] = y.astype(o_ref.dtype)


def _pe_train_dense_kernel(seed_ref, x_ref, pe_ref, o_ref, *, p, sd, rb):
    # x_ref/pe_ref/o_ref: (1, rb, 128); grid = (row_blocks, B).
    r = pl.program_id(0)
    b = pl.program_id(1)
    y = x_ref[...].astype(jnp.float32) + pe_ref[...].astype(jnp.float32)
    shape = x_ref.shape
    base = b * jnp.int32(sd) + r * jnp.int32(rb * _LANE)
    row = lax.broadcasted_iota(jnp.int32, shape, 1)
    col = lax.broadcasted_iota(jnp.int32, shape, 2)
    g = base + row * jnp.int32(_LANE) + col  # global element index (mod 2^31)
    o_ref[...] = _apply_dropout(y, g, seed_ref[0], p).astype(o_ref.dtype)


def _pe_train_flat_kernel(seed_ref, x_ref, pe_ref, o_ref, *, p, sdp, tn):
    # x_ref/o_ref: (B, tn); pe_ref: (1, tn); grid = (col_blocks,).
    j = pl.program_id(0)
    y = x_ref[...].astype(jnp.float32) + pe_ref[...].astype(jnp.float32)
    shape = x_ref.shape
    row = lax.broadcasted_iota(jnp.int32, shape, 0)
    col = lax.broadcasted_iota(jnp.int32, shape, 1)
    g = row * jnp.int32(sdp) + j * jnp.int32(tn) + col  # global element index
    o_ref[...] = _apply_dropout(y, g, seed_ref[0], p).astype(o_ref.dtype)


# ---------------------------------------------------------------------------
# Wrapper
# ---------------------------------------------------------------------------
def _round_up(x: int, m: int) -> int:
    return (x + m - 1) // m * m


def positional_encoding(x, pe_table, *, p: float = 0.1, training: bool = False, seed: int = 0):
    """x: (B, S, D). pe_table: (max_len, D) float32. Returns dropout(x + pe[:S])."""
    if not (0.0 <= p <= 1.0):
        raise ValueError(f"dropout p must be in [0, 1], got {p}")
    B, S, D = x.shape
    SD = S * D
    apply_dropout = training and p > 0.0
    if apply_dropout and p >= 1.0:
        return jnp.zeros_like(x)

    # NOTE: under jax.jit this slice/cast fuses with the surrounding graph; for
    # eager callers, pre-slicing/casting the table once amortizes it.
    pe = pe_table[:S, :].astype(x.dtype)
    itemsize = jnp.dtype(x.dtype).itemsize
    target = (2 << 20) if apply_dropout else (4 << 20)
    seed_arr = jnp.asarray([seed], dtype=jnp.int32)

    dense = (SD % _LANE == 0) and ((SD // _LANE) % _SUBLANE == 0)

    if dense:
        # Sublane/lane-dense layout (B, R, 128), R multiple of 8.
        R = SD // _LANE
        x3 = x.reshape(B, R, _LANE)
        pe3 = pe.reshape(1, R, _LANE)
        rb = max(_SUBLANE,
                 min(R, (target // (_LANE * itemsize)) // _SUBLANE * _SUBLANE))
        # Guarantee >= 2 grid steps (v7x megacore) when the shape allows it.
        if B == 1 and rb >= R and R >= 2 * _SUBLANE:
            rb = max(_SUBLANE, (R // 2) // _SUBLANE * _SUBLANE)
        grid = (pl.cdiv(R, rb), B)  # batch innermost -> pe block re-fetch skipped
        blk = (1, rb, _LANE)
        x_spec = pl.BlockSpec(blk, lambda r, b, *_: (b, r, 0))
        pe_spec = pl.BlockSpec(blk, lambda r, b, *_: (0, r, 0))
        o_spec = pl.BlockSpec(blk, lambda r, b, *_: (b, r, 0))
        out_shape = jax.ShapeDtypeStruct((B, R, _LANE), x.dtype)
        cparams = pltpu.CompilerParams(
            dimension_semantics=("parallel", "parallel"),
            vmem_limit_bytes=_VMEM_LIMIT,
        )
        if not apply_dropout:
            out3 = pl.pallas_call(
                _pe_add_kernel,
                out_shape=out_shape,
                grid=grid,
                in_specs=[x_spec, pe_spec],
                out_specs=o_spec,
                compiler_params=cparams,
            )(x3, pe3)
        else:
            kern = functools.partial(_pe_train_dense_kernel, p=float(p), sd=SD, rb=rb)
            out3 = pl.pallas_call(
                kern,
                out_shape=out_shape,
                grid_spec=pltpu.PrefetchScalarGridSpec(
                    num_scalar_prefetch=1,
                    grid=grid,
                    in_specs=[x_spec, pe_spec],
                    out_specs=o_spec,
                ),
                compiler_params=cparams,
            )(seed_arr, x3, pe3)
        return out3.reshape(B, S, D)

    # ---- Flat fallback: (B, SDp) with lane-dense column tiles. -------------
    SDp = _round_up(SD, _LANE)
    x2 = x.reshape(B, SD)
    pe2 = pe.reshape(1, SD)
    if SDp != SD:
        x2 = jnp.pad(x2, ((0, 0), (0, SDp - SD)))
        pe2 = jnp.pad(pe2, ((0, 0), (0, SDp - SD)))

    Bp = _round_up(B, _SUBLANE)  # VMEM tiles pad B up to 8 sublanes
    tn = max(_LANE, min(SDp, (target // (Bp * itemsize)) // _LANE * _LANE))
    if tn >= SDp and SDp >= 2 * _LANE:
        tn = max(_LANE, (SDp // 2) // _LANE * _LANE)  # >= 2 grid steps
    grid = (pl.cdiv(SDp, tn),)
    x_spec = pl.BlockSpec((B, tn), lambda j, *_: (0, j))
    pe_spec = pl.BlockSpec((1, tn), lambda j, *_: (0, j))
    o_spec = pl.BlockSpec((B, tn), lambda j, *_: (0, j))
    out_shape = jax.ShapeDtypeStruct((B, SDp), x.dtype)
    cparams = pltpu.CompilerParams(
        dimension_semantics=("parallel",),
        vmem_limit_bytes=_VMEM_LIMIT,
    )
    if not apply_dropout:
        out2 = pl.pallas_call(
            _pe_add_kernel,
            out_shape=out_shape,
            grid=grid,
            in_specs=[x_spec, pe_spec],
            out_specs=o_spec,
            compiler_params=cparams,
        )(x2, pe2)
    else:
        kern = functools.partial(_pe_train_flat_kernel, p=float(p), sdp=SDp, tn=tn)
        out2 = pl.pallas_call(
            kern,
            out_shape=out_shape,
            grid_spec=pltpu.PrefetchScalarGridSpec(
                num_scalar_prefetch=1,
                grid=grid,
                in_specs=[x_spec, pe_spec],
                out_specs=o_spec,
            ),
            compiler_params=cparams,
        )(seed_arr, x2, pe2)

    if SDp != SD:
        out2 = out2[:, :SD]
    return out2.reshape(B, S, D)


# ---------------------------------------------------------------------------
# Self-test
# ---------------------------------------------------------------------------
if __name__ == "__main__":
    MAX_LEN = 64  # small synthetic max_len (module default is 5000)
    p = 0.1

    # --- Flat fallback path: B=2, S=8, D=32 (SD=256) -----------------------
    B, S, D = 2, 8, 32
    key = jax.random.PRNGKey(0)
    x = jax.random.normal(key, (B, S, D), dtype=jnp.float32)
    pe_table = make_positional_table(MAX_LEN, D)
    ref = x + pe_table[:S, :][None, :, :]

    out = jax.block_until_ready(positional_encoding(x, pe_table, p=p, training=False))
    assert out.shape == (B, S, D)
    assert jnp.allclose(out, ref, atol=1e-6), "eval (flat path) mismatch vs reference"

    out_tr = jax.block_until_ready(
        positional_encoding(x, pe_table, p=p, training=True, seed=123))
    scaled = ref / (1.0 - p)
    ok = jnp.isclose(out_tr, 0.0) | jnp.isclose(out_tr, scaled, rtol=1e-5, atol=1e-6)
    assert bool(jnp.all(ok)), "training (flat path) dropout mismatch"
    dropped = jnp.isclose(out_tr, 0.0) & ~jnp.isclose(scaled, 0.0)
    frac = float(jnp.mean(dropped.astype(jnp.float32)))
    assert 0.0 < frac < 0.5, f"implausible drop fraction {frac}"

    # --- Dense (sublane-packed) path: B=2, S=8, D=128 (SD=1024) ------------
    D2 = 128
    x2 = jax.random.normal(jax.random.PRNGKey(1), (B, S, D2), dtype=jnp.float32)
    pe_table2 = make_positional_table(MAX_LEN, D2)
    ref2 = x2 + pe_table2[:S, :][None, :, :]

    out2 = jax.block_until_ready(positional_encoding(x2, pe_table2, p=p, training=False))
    assert jnp.allclose(out2, ref2, atol=1e-6), "eval (dense path) mismatch vs reference"

    out2_tr = jax.block_until_ready(
        positional_encoding(x2, pe_table2, p=p, training=True, seed=7))
    ok2 = (jnp.isclose(out2_tr, 0.0)
           | jnp.isclose(out2_tr, ref2 / (1.0 - p), rtol=1e-5, atol=1e-6))
    assert bool(jnp.all(ok2)), "training (dense path) dropout mismatch"

    print("KERNEL_OK")
</pallas_src>

<mosaic_0001>
module attributes {stable_mosaic.version = 11 : i64} {
  func.func @_pe_add_kernel(%arg0: i32, %arg1: memref<2x128xf32, #tpu.memory_space<vmem>>, %arg2: memref<1x128xf32, #tpu.memory_space<vmem>>, %arg3: memref<2x128xf32, #tpu.memory_space<vmem>>) attributes {dimension_semantics = [#tpu.dimension_semantics<parallel>], iteration_bounds = array<i64: 2>, scalar_prefetch = 0 : i64, scratch_operands = 0 : i64, tpu.core_type = #tpu.core_type<tc>, window_params = [{transform_indices = @transform_0, window_bounds = array<i64: 2, 128>}, {transform_indices = @transform_1, window_bounds = array<i64: 1, 128>}, {transform_indices = @transform_2, window_bounds = array<i64: 2, 128>}]} {
    %c0 = arith.constant 0 : index
    %c0_0 = arith.constant 0 : index
    %0 = vector.load %arg1[%c0, %c0_0] : memref<2x128xf32, #tpu.memory_space<vmem>>, vector<2x128xf32>
    %c0_1 = arith.constant 0 : index
    %c0_2 = arith.constant 0 : index
    %1 = vector.load %arg2[%c0_1, %c0_2] : memref<1x128xf32, #tpu.memory_space<vmem>>, vector<1x128xf32>
    %2 = vector.broadcast %1 : vector<1x128xf32> to vector<2x128xf32>
    %3 = arith.addf %0, %2 : vector<2x128xf32>
    %c0_3 = arith.constant 0 : index
    %c0_4 = arith.constant 0 : index
    %4 = vector.load %arg3[%c0_3, %c0_4] : memref<2x128xf32, #tpu.memory_space<vmem>>, vector<2x128xf32>
    tpu.vector_store %arg3[%c0_3, %c0_4], %3 {strides = array<i32>} : memref<2x128xf32, #tpu.memory_space<vmem>>, vector<2x128xf32>,
    return
  }
  func.func @transform_0(%arg0: i32) -> (i32, i32) {
    %c0_i32 = arith.constant 0 : i32
    %c0_i32_0 = arith.constant 0 : i32
    return %c0_i32, %arg0 : i32, i32
  }
  func.func @transform_1(%arg0: i32) -> (i32, i32) {
    %c0_i32 = arith.constant 0 : i32
    %c0_i32_0 = arith.constant 0 : i32
    return %c0_i32, %arg0 : i32, i32
  }
  func.func @transform_2(%arg0: i32) -> (i32, i32) {
    %c0_i32 = arith.constant 0 : i32
    %c0_i32_0 = arith.constant 0 : i32
    return %c0_i32, %arg0 : i32, i32
  }
}

</mosaic_0001>

<bundles_post_ra>
// kernel: tpu_custom_call.1
= control target key start
LH: loop header
LB: loop body
LE: loop exit
PB: predicated region body
PF: predicated region fallthrough
CT: control target
= control target key end

     0   :  { %7 = vsyncpa [#allocation3], 0  ;;  %s705_s0 = inlined_call_operand.hbm [shape: f32[2,256], index: 0, kind: input, shape index: {}]   ;;  %s706_s1 = inlined_call_operand.hbm [shape: f32[1,256], index: 1, kind: input, shape index: {}]   ;;  %s707_s2 = inlined_call_operand.hbm [shape: f32[2,256], index: 2, kind: output, shape index: {}]  }
   0x1   :  { %9 = vsyncpa [#allocation3 + $0x1], 0 }
   0x2   :  { %10 = vsyncpa [#allocation6], 0 }
   0x3   :  { %12 = vsyncpa [#allocation6 + $0x1], 0 }
   0x4   :  { %13 = vsyncpa [#allocation4], 0 }
   0x5   :  { %15 = vsyncpa [#allocation4 + $0x1], 0  ;;  %s516_s9 = smov 0   ;;  %s518_s10 = smov 0  }
   0x6   :  { %s520_s11 = smov 0   ;;  %s522_s12 = smov 0  }
   0x7 LB: > { %s537_s13 = sadd.s32 4294967295, %s496_s12   ;;  %s307_s14 = sadd.s32 4294967294, %s496_s12   ;;  %s496_s12 = sphi %s522_s12, %s726_s12   ;;  %s492_s11 = sphi %s520_s11, %s725_s11   ;;  %s488_s10 = sphi %s518_s10, %s724_s10   ;;  %s484_s9 = sphi %s516_s9, %s723_s9  }
   0x8   : > { %s541_s15 = sadd.s32 1, %s496_s12   ;;  %s28_s16 = sadd.s32 1, %s492_s11 }
   0x9   : > { %s25_s17 = ssub.s32 %s496_s12, %s541_s15  ;;  %p35_p0 = scmp.ne.s32.totalorder %s492_s11, %s488_s10 }
   0xa   : > { %p26_p1 = scmp.eq.s32.totalorder %s25_s17, 0  ;;  %p36_p2 = scmp.eq.s32.totalorder %s496_s12, 0 }
   0xb   : > { %p41_p3 = scmp.ne.s32.totalorder %s488_s10, %s484_s9  ;;  %p42_p4 = scmp.eq.s32.totalorder %s537_s13, 0 }
   0xc   : > { %s553_s18 = scalar_select %p26_p1, %s492_s11, %s28_s16  }
   0xd   : > { %p555_p5 = por %p36_p2, %p35_p0  ;;  %p559_p6 = por %p42_p4, %p41_p3 }
   0xe   : > { %p91_p7 = scmp.eq.s32.totalorder %s537_s13, 1  ;;  %p97_p8 = scmp.eq.s32.totalorder %s307_s14, 1 }
   0xf   : > { %s711_s20 = scalar_select %p559_p6, 1, 0 }
  0x10   : > { %p338_p10 = scmp.lt.s32.totalorder %s496_s12, 2  ;;  %p566_p11 = por %p91_p7, %p35_p0 }
  0x11   : > { %p570_p12 = por %p97_p8, %p41_p3  ;;  %s575_s23 = sand.u32 1, %s492_s11  }
  0x12   : > { %s712_s21 = scalar_select %p566_p11, 1, 0 }
  0x13   : > { %s713_s22 = scalar_select %p570_p12, 1, 0 }
  0x14   : > { %s311_s24 = sshll.u32 %s496_s12, 5  ;;  %s310_s25 = sshll.u32 %s575_s23, 1 }
  0x15   : > { %s582_s28 = scalar_lea.hbm %s705_s0, %s311_s24  ;;  %s121_s29 = scalar_lea.vmem [#allocation2], %s310_s25 }
  0x16   : > { %s128_s30 = sshll.u32 %s121_s29, 4  ;;  %p586_p13 = pnand %p338_p10, %p555_p5  ;;  %s590_s30 = int_to_ptr.vmem [resolvable:$true] %s128_s30 }
  0x17   : > { %s118_s4 = scalar_lea.sflag [#allocation3], %s575_s23  ;;  %s372_s5 = scalar_lea.hbm %s582_s28, 32 }
  0x18   : > { %p373_p2 = scmp.ne.s32.totalorder %s582_s28, %s372_s5  ;;  %p374_p3 = pneg %p586_p13 }
  0x19   : > { %s377_s8 = scalar_lea.hbm %s705_s0, 64  ;;  %p378_p5 = scmp.lt.s32.totalorder %s582_s28, %s705_s0 }
  0x1a   : > { %p375_p4 = pnand %p374_p3, %p373_p2  ;;  %p379_p8 = scmp.lt.s32.totalorder %s377_s8, %s372_s5 }
  0x1c   : > { %p376_p7 = pneg %p375_p4  ;;  %p380_p10 = por %p379_p8, %p378_p5 }
  0x1e   : > { %p381_p9 = pnand %p380_p10, %p376_p7 }
  0x20   : > { %384 = shalt.err (!%p381_p9)
}
  0x21   : > { %s385_s17 = scalar_lea.vmem %s590_s30, 32  ;;  %s498_s19 = smov [#allocation2]  }
  0x22   : > { %p386_p0 = scmp.ne.s32.totalorder %s590_s30, %s385_s17  ;;  %s390_s24 = sshll.u32 %s498_s19, 4  ;;  %s391_s24 = int_to_ptr.vmem [resolvable:$false] %s390_s24 }
  0x23   : > { %s392_s25 = scalar_lea.vmem %s391_s24, 64  ;;  %p393_p1 = scmp.lt.s32.totalorder %s590_s30, %s391_s24 }
  0x24   : > { %p388_p2 = pnand %p386_p0, %p374_p3  ;;  %p394_p12 = scmp.lt.s32.totalorder %s392_s25, %s385_s17 }
  0x26   : > { %p389_p4 = pneg %p388_p2  ;;  %p395_p11 = por %p394_p12, %p393_p1 }
  0x28   : > { %p396_p5 = pnand %p395_p11, %p389_p4 }
  0x2a   : > { %399 = shalt.err (!%p396_p5)
}
  0x2b   : > { %330 = dma.hbm_to_vmem [thread:$0]  (!%p586_p13), %s582_s28, 32, %s590_s30, %s118_s4  }
  0x2c   : > { %p715_p9 = scmp.lt.s32.totalorder %s496_s12, 3  ;;  %p716_p0 = scmp.ge.s32.totalorder %s496_s12, 1 }
  0x2d   : > { %s312_s27 = sshll.u32 %s496_s12, 4  ;;  %s138_s7 = scalar_lea.vmem [#allocation5], %s575_s23 }
  0x2e   : > { %p623_p7 = pnand %p716_p0, %p715_p9  ;;  %s631_s6 = scalar_lea.hbm %s706_s1, %s312_s27 }
  0x2f   : > { %s145_s8 = sshll.u32 %s138_s7, 4  ;;  %s136_s14 = scalar_lea.sflag [#allocation6], %s575_s23  ;;  %s146_s8 = int_to_ptr.vmem [resolvable:$true] %s145_s8 }
  0x30   : > { %s717_s26 = scalar_select %p623_p7, 1, 0 }
  0x31   : > { %s400_s28 = scalar_lea.hbm %s631_s6, 16  ;;  %s405_s16 = scalar_lea.hbm %s706_s1, 32 }
  0x32   : > { %p401_p11 = scmp.ne.s32.totalorder %s631_s6, %s400_s28  ;;  %p406_p8 = scmp.lt.s32.totalorder %s631_s6, %s706_s1 }
  0x33   : > { %p407_p10 = scmp.lt.s32.totalorder %s405_s16, %s400_s28 }
  0x34   : > { %p403_p12 = pnand %p401_p11, %p374_p3 }
  0x35   : > { %p408_p2 = por %p407_p10, %p406_p8 }
  0x36   : > { %p404_p1 = pneg %p403_p12 }
  0x38   : > { %p409_p4 = pnand %p408_p2, %p404_p1 }
  0x3a   : > { %412 = shalt.err (!%p409_p4)
}
  0x3b   : > { %s413_s24 = scalar_lea.vmem %s146_s8, 16  ;;  %s499_s23 = smov [#allocation5]  }
  0x3c   : > { %p414_p5 = scmp.ne.s32.totalorder %s146_s8, %s413_s24  ;;  %s418_s25 = sshll.u32 %s499_s23, 4  ;;  %s419_s25 = int_to_ptr.vmem [resolvable:$false] %s418_s25 }
  0x3d   : > { %s420_s27 = scalar_lea.vmem %s419_s25, 32  ;;  %p421_p11 = scmp.lt.s32.totalorder %s146_s8, %s419_s25 }
  0x3e   : > { %p416_p9 = pnand %p414_p5, %p374_p3  ;;  %p422_p12 = scmp.lt.s32.totalorder %s420_s27, %s413_s24 }
  0x40   : > { %p417_p0 = pneg %p416_p9  ;;  %p423_p6 = por %p422_p12, %p421_p11 }
  0x42   : > { %p424_p7 = pnand %p423_p6, %p417_p0 }
  0x44   : > { %427 = shalt.err (!%p424_p7)
}
  0x45   : > { %333 = dma.hbm_to_vmem [thread:$0]  (!%p586_p13), %s631_s6, 16, %s146_s8, %s136_s14  }
  0x46   : > { %p718_p1 = scmp.ne.s32.totalorder %s717_s26, 0 }
  0x47   : > { %s656_s29 = sand.u32 (!%p718_p1), 1, %s488_s10   ;;  %p719_p3 = scmp.ne.s32.totalorder (!%p718_p1), %s711_s20, 0 }
  0x48   : > { %154 = sbr.rel (%p718_p1) target bundleno = 105 (0x69), region = 28  ;;  %s314_s5 = sshll.u32 (!%p718_p1), %s656_s29, 1 }
  0x49   : > { %s157_s7 = scalar_lea.sflag (!%p718_p1), [#allocation3], %s656_s29  ;;  %s160_s28 = scalar_lea.vmem (!%p718_p1), [#allocation2], %s314_s5 }
  0x4d   : > { %471 = dma.done.wait (%p719_p3), %s157_s7, 32  }
  0x4e   : > { %473 = vsyncadd (%p719_p3), %s157_s7, 4294967264  ;;  %s166_s3 = scalar_lea.sflag [#allocation6], %s656_s29  ;;  %s168_s26 = scalar_lea.vmem [#allocation5], %s656_s29 }
  0x4f   : > { %475 = dma.done.wait (%p719_p3), %s166_s3, 16  }
  0x50   : > { %477 = vsyncadd (%p719_p3), %s166_s3, 4294967280  ;;  %s192_s6 = scalar_lea.vmem [#allocation7], %s314_s5  ;;  %s318_s14 = sshll.u32 %s537_s13, 5  ;;  %v193_v0 = vld [vmem:[%s160_s28] sm:$0x3] }
  0x51   : > { %s217_s8 = sshll.u32 %s192_s6, 4  ;;  %v316_v1 = vld [vmem:[%s168_s26] ss:$0 sm:$0xff]  ;;  %s215_s16 = scalar_lea.hbm %s707_s2, %s318_s14  ;;  %s218_s8 = int_to_ptr.vmem [resolvable:$true] %s217_s8 }
  0x52   : > { %v201_v2 = vadd.f32 %v316_v1, %v193_v0  ;;  %s204_s17 = scalar_lea.sflag [#allocation4], %s656_s29  ;;  %s428_s19 = scalar_lea.vmem %s218_s8, 32 }
  0x53   : > { %p429_p6 = scmp.ne.s32.totalorder %s218_s8, %s428_s19  ;;  %p720_p13 = scmp.ne.s32.totalorder %s712_s21, 0 }
  0x54   : > { %202 = vst [vmem:[%s192_s6] sm:$0x3] %v201_v2  ;;  %s500_s20 = smov [#allocation7]  }
  0x55   : > { %p430_p7 = pnand %p429_p6, %p720_p13  ;;  %s432_s24 = sshll.u32 %s500_s20, 4  ;;  %s433_s24 = int_to_ptr.vmem [resolvable:$false] %s432_s24 }
  0x56   : > { %s434_s23 = scalar_lea.vmem %s433_s24, 64  ;;  %p435_p10 = scmp.lt.s32.totalorder %s218_s8, %s433_s24 }
  0x57   : > { %p431_p8 = pneg %p430_p7  ;;  %p436_p2 = scmp.lt.s32.totalorder %s434_s23, %s428_s19 }
  0x59   : > { %p437_p4 = por %p436_p2, %p435_p10 }
  0x5b   : > { %p438_p5 = pnand %p437_p4, %p431_p8 }
  0x5d   : > { %441 = shalt.err (!%p438_p5)
}
  0x5e   : > { %s442_s13 = scalar_lea.hbm %s215_s16, 32  ;;  %s446_s29 = scalar_lea.hbm %s707_s2, 64 }
  0x5f   : > { %p443_p9 = scmp.ne.s32.totalorder %s215_s16, %s442_s13  ;;  %p447_p12 = scmp.lt.s32.totalorder %s215_s16, %s707_s2 }
  0x60   : > { %p448_p1 = scmp.lt.s32.totalorder %s446_s29, %s442_s13 }
  0x61   : > { %p444_p0 = pnand %p443_p9, %p720_p13 }
  0x62   : > { %p449_p3 = por %p448_p1, %p447_p12 }
  0x63   : > { %p445_p11 = pneg %p444_p0 }
  0x65   : > { %p450_p6 = pnand %p449_p3, %p445_p11 }
  0x67   : > { %453 = shalt.err (!%p450_p6)
}
  0x68   : > { %325 = dma.vmem_to_hbm [thread:$0]  (%p720_p13), %s218_s8, 32, %s215_s16, %s204_s17  }
  0x69 PF: > { %s229_s28 = sand.u32 1, %s484_s9   ;;  %p721_p7 = scmp.ne.s32.totalorder %s713_s22, 0 }
  0x6a   : > { %p722_p8 = scmp.ge.s32.totalorder %s496_s12, 2  ;;  %s230_s3 = scalar_lea.sflag [#allocation4], %s229_s28 }
  0x6c   : > { %p335_p10 = pnand %p722_p8, %p721_p7 }
  0x6e   : > { %p336_p2 = pneg %p335_p10 }
  0x70   : > { %479 = dma.done.wait (%p336_p2), %s230_s3, 32  }
  0x71   : > { %481 = vsyncadd (%p336_p2), %s230_s3, 4294967264  ;;  %p18_p4 = scmp.ge.s32.totalorder %s541_s15, 4   ;;  %s723_s9 = smov %s488_s10 }
  0x72   : > { %s724_s10 = smov %s492_s11  ;;  %s725_s11 = smov %s553_s18 }
  0x73   : > { %s726_s12 = smov %s541_s15  ;;  %20 = sbr.rel (!%p18_p4) target bundleno = 7 (0x7), region = 86 }
  0x78   :  { %235 = vsyncpa [#allocation3], 1 }
  0x79   :  { %237 = vsyncpa [#allocation3 + $0x1], 1 }
  0x7a   :  { %238 = vsyncpa [#allocation6], 1 }
  0x7b   :  { %240 = vsyncpa [#allocation6 + $0x1], 1 }
  0x7c   :  { %241 = vsyncpa [#allocation4], 1 }
  0x7d   :  { %243 = vsyncpa [#allocation4 + $0x1], 1 }

</bundles_post_ra>
